<compile_context>
chip_gen: v6e
topology: v6e:2x2x1
jax: 0.10.0
libtpu: 0.0.40
codegen_flags: <defaults>
</compile_context>

<pallas_src>
import jax
import jax.numpy as jnp
from jax.experimental import pallas as pl
from jax.experimental.pallas import tpu as pltpu


def _rel_pos_add_kernel(x_ref, enc_ref, o_ref):
    # x_ref:   (tb, tf) tile of the flattened (B, N*D) input
    # enc_ref: (1,  tf) tile of the flattened encoding row (batch-invariant)
    # o_ref:   (tb, tf) output tile
    # Cast in-kernel (free: DMA-bound) with PyTorch-style promotion.
    o_ref[...] = x_ref[...].astype(o_ref.dtype) + enc_ref[...].astype(o_ref.dtype)


def _round_down(v, m):
    return (v // m) * m


def _round_up(v, m):
    return ((v + m - 1) // m) * m


def _cdiv(a, b):
    return -(-a // b)


def _choose_tiles(B, F, block_itemsize, sublane_mult, target_block_bytes,
                  small_block_bytes):
    """Pick (tb, tf) tile sizes for the flattened (B, F) broadcast-add."""
    total_bytes = B * F * block_itemsize
    if total_bytes <= small_block_bytes:
        # Tiny problem: per-step overhead dominates; a single block is best.
        return B, F

    row_bytes = F * block_itemsize
    if row_bytes * sublane_mult <= target_block_bytes and B >= 2 * sublane_mult:
        # Full feature rows per block; tile over batch.
        tb = _round_down(target_block_bytes // row_bytes, sublane_mult)
        # Cap tb so there are >= 4 (else >= 2) batch steps: enables in/out DMA
        # overlap and the v7x 2-TensorCore split of this bandwidth-bound copy.
        for steps in (4, 2):
            cap = _round_up(_cdiv(B, steps), sublane_mult)
            if _cdiv(B, cap) >= steps:
                tb = min(tb, cap)
                break
        return max(sublane_mult, tb), F

    # Huge rows (or very small batch): also tile the feature axis (128-lane
    # multiples); batch tile is either the full (small) batch or one sublane group.
    tb = B if B <= sublane_mult else sublane_mult
    tf = _round_down(target_block_bytes // max(1, tb * block_itemsize), 128)
    if tf <= 0:
        tf = 128
    if tf >= F:
        tf = F  # block equal to full dim is always legal
    return tb, tf


def relative_position_encoding_n(x, encoding, *,
                                 target_block_bytes=8 * 1024 * 1024,
                                 small_block_bytes=512 * 1024):
    """x: (B, N, D); encoding: (max_len, d_model), max_len >= N, d_model == D."""
    B, N, D = x.shape
    max_len, d_model = encoding.shape
    if N > max_len:
        raise ValueError(f"num_signals {N} exceeds max_len {max_len}")
    if D != d_model:
        raise ValueError(f"hidden_dim {D} does not match d_model {d_model}")

    out_dtype = jnp.result_type(x.dtype, encoding.dtype)  # PyTorch promotion
    x_item = jnp.dtype(x.dtype).itemsize
    enc_item = jnp.dtype(encoding.dtype).itemsize
    out_item = jnp.dtype(out_dtype).itemsize
    block_itemsize = max(x_item, out_item)                 # sizes largest block
    sublane_mult = max(8, 32 // min(x_item, out_item))     # 8/16/32 packing

    F = N * D
    x2d = x.reshape(B, F)                 # layout-only for row-major inputs
    enc2d = encoding[:N, :].reshape(1, F)  # tiny parameter slice

    tb, tf = _choose_tiles(B, F, block_itemsize, sublane_mult,
                           target_block_bytes, small_block_bytes)
    nf = _cdiv(F, tf)
    nb = _cdiv(B, tb)
    # Batch axis innermost: the encoding block index (0, f) is constant across
    # the inner loop, so the encoding tile stays resident in VMEM.
    grid = (nf, nb)

    # Double-buffered x-in + out blocks plus the (small) encoding tile.
    working_set = 2 * tb * tf * x_item + 2 * tb * tf * out_item + 2 * tf * enc_item
    vmem_limit = min(max(32 * 1024 * 1024, working_set + (4 << 20)),
                     48 * 1024 * 1024)

    cost = pl.CostEstimate(
        flops=B * F,            # one add per element
        transcendentals=0,
        bytes_accessed=B * F * x_item + F * enc_item + B * F * out_item,
    )

    out2d = pl.pallas_call(
        _rel_pos_add_kernel,
        out_shape=jax.ShapeDtypeStruct((B, F), out_dtype),
        grid_spec=pltpu.PrefetchScalarGridSpec(
            num_scalar_prefetch=0,
            grid=grid,
            in_specs=[
                # Many batch rows per step; lane-dense last dim.
                pl.BlockSpec((tb, tf), lambda f, b: (b, f)),
                # Encoding row: block index constant along the inner (batch) axis.
                pl.BlockSpec((1, tf), lambda f, b: (0, f)),
            ],
            out_specs=pl.BlockSpec((tb, tf), lambda f, b: (b, f)),
        ),
        compiler_params=pltpu.CompilerParams(
            dimension_semantics=("parallel", "parallel"),
            vmem_limit_bytes=vmem_limit,
        ),
        cost_estimate=cost,
    )(x2d, enc2d)

    return out2d.reshape(B, N, D)


if __name__ == "__main__":
    # Small shapes consistent with the module's forward:
    #   batch=2, num_signals=8, hidden_dim=32, max_len=16 (>= num_signals).
    batch, num_signals, hidden_dim = 2, 8, 32
    max_len, d_model = 16, hidden_dim

    key = jax.random.PRNGKey(0)
    kx, kenc, kx2, kenc2 = jax.random.split(key, 4)
    x = jax.random.normal(kx, (batch, num_signals, hidden_dim), dtype=jnp.float32)
    # Deterministic stand-in for nn.Parameter(torch.randn(max_len, d_model)).
    encoding = jax.random.normal(kenc, (max_len, d_model), dtype=jnp.float32)

    out = jax.block_until_ready(relative_position_encoding_n(x, encoding))
    ref = x + encoding[:num_signals, :][None, :, :]
    assert out.shape == (batch, num_signals, hidden_dim)
    assert out.dtype == ref.dtype
    assert jnp.allclose(out, ref, atol=1e-6, rtol=1e-6)

    # Mixed precision: bf16 activations + f32 parameter promote to f32 (PyTorch-style).
    x_bf16 = x.astype(jnp.bfloat16)
    out_mixed = jax.block_until_ready(relative_position_encoding_n(x_bf16, encoding))
    ref_mixed = x_bf16.astype(jnp.float32) + encoding[:num_signals, :][None, :, :]
    assert out_mixed.dtype == jnp.float32
    assert jnp.allclose(out_mixed, ref_mixed, atol=1e-6, rtol=1e-6)

    # Larger, ragged-batch case exercising the batch-tiled path (>= 4 grid steps,
    # last block partially filled).
    B2, N2, D2, ML2 = 130, 32, 64, 64
    x2 = jax.random.normal(kx2, (B2, N2, D2), dtype=jnp.float32)
    enc2 = jax.random.normal(kenc2, (ML2, D2), dtype=jnp.float32)
    out2 = jax.block_until_ready(relative_position_encoding_n(x2, enc2))
    ref2 = x2 + enc2[:N2, :][None, :, :]
    assert out2.shape == (B2, N2, D2)
    assert jnp.allclose(out2, ref2, atol=1e-6, rtol=1e-6)

    print("KERNEL_OK")
</pallas_src>

<mosaic_0001>
module attributes {stable_mosaic.version = 11 : i64} {
  func.func @_rel_pos_add_kernel(%arg0: i32, %arg1: i32, %arg2: memref<2x256xf32, #tpu.memory_space<vmem>>, %arg3: memref<1x256xf32, #tpu.memory_space<vmem>>, %arg4: memref<2x256xf32, #tpu.memory_space<vmem>>) attributes {dimension_semantics = [#tpu.dimension_semantics<parallel>, #tpu.dimension_semantics<parallel>], iteration_bounds = array<i64: 1, 1>, scalar_prefetch = 0 : i64, scratch_operands = 0 : i64, tpu.core_type = #tpu.core_type<tc>, window_params = [{transform_indices = @transform_0, window_bounds = array<i64: 2, 256>}, {transform_indices = @transform_1, window_bounds = array<i64: 1, 256>}, {transform_indices = @transform_2, window_bounds = array<i64: 2, 256>}]} {
    %c0 = arith.constant 0 : index
    %c0_0 = arith.constant 0 : index
    %0 = vector.load %arg2[%c0, %c0_0] : memref<2x256xf32, #tpu.memory_space<vmem>>, vector<2x256xf32>
    %c0_1 = arith.constant 0 : index
    %c0_2 = arith.constant 0 : index
    %1 = vector.load %arg3[%c0_1, %c0_2] : memref<1x256xf32, #tpu.memory_space<vmem>>, vector<1x256xf32>
    %2 = vector.broadcast %1 : vector<1x256xf32> to vector<2x256xf32>
    %3 = arith.addf %0, %2 : vector<2x256xf32>
    %c0_3 = arith.constant 0 : index
    %c0_4 = arith.constant 0 : index
    %4 = vector.load %arg4[%c0_3, %c0_4] : memref<2x256xf32, #tpu.memory_space<vmem>>, vector<2x256xf32>
    tpu.vector_store %arg4[%c0_3, %c0_4], %3 {strides = array<i32>} : memref<2x256xf32, #tpu.memory_space<vmem>>, vector<2x256xf32>,
    return
  }
  func.func @transform_0(%arg0: i32, %arg1: i32) -> (i32, i32) {
    %c0_i32 = arith.constant 0 : i32
    return %arg1, %arg0 : i32, i32
  }
  func.func @transform_1(%arg0: i32, %arg1: i32) -> (i32, i32) {
    %c0_i32 = arith.constant 0 : i32
    %c0_i32_0 = arith.constant 0 : i32
    return %c0_i32, %arg0 : i32, i32
  }
  func.func @transform_2(%arg0: i32, %arg1: i32) -> (i32, i32) {
    %c0_i32 = arith.constant 0 : i32
    return %arg1, %arg0 : i32, i32
  }
}

</mosaic_0001>

<bundles_post_ra>
// kernel: tpu_custom_call.1
= control target key start
LH: loop header
LB: loop body
LE: loop exit
PB: predicated region body
PF: predicated region fallthrough
CT: control target
= control target key end

     0   :  { %7 = vsyncpa [#allocation3], 0  ;;  %s172_s0 = inlined_call_operand.hbm [shape: f32[2,256], index: 0, kind: input, shape index: {}]   ;;  %s173_s1 = inlined_call_operand.hbm [shape: f32[1,256], index: 1, kind: input, shape index: {}]   ;;  %s174_s2 = inlined_call_operand.hbm [shape: f32[2,256], index: 2, kind: output, shape index: {}]  }
   0x1   :  { %8 = vsyncpa [#allocation6], 0 }
   0x2   :  { %9 = vsyncpa [#allocation4], 0  ;;  %s144_s9 = smov [#allocation2]   ;;  %s145_s11 = smov [#allocation5]  }
   0x3   :  { %s16_s10 = sshll.u32 %s144_s9, 4  ;;  %s26_s12 = sshll.u32 %s145_s11, 4  ;;  %s17_s10 = int_to_ptr.vmem [resolvable:$true] %s16_s10  ;;  %s27_s12 = int_to_ptr.vmem [resolvable:$true] %s26_s12 }
   0x4   :  { %s86_s13 = scalar_lea.vmem %s17_s10, 64  ;;  %p91_p1 = scmp.lt.s32.totalorder %s17_s10, %s17_s10 }
   0x5   :  { %p87_p0 = scmp.ne.s32.totalorder %s17_s10, %s86_s13  ;;  %p92_p2 = scmp.lt.s32.totalorder %s86_s13, %s86_s13 }
   0x7   :  { %p93_p3 = por %p92_p2, %p91_p1 }
   0x9   :  { %p94_p4 = pnand %p93_p3, %p87_p0 }
   0xb   :  { %97 = shalt.err (!%p94_p4)
}
   0xc   :  { %19 = dma.hbm_to_vmem [thread:$0]  %s172_s0, 64, %s17_s10, [#allocation3]  }
   0xd   :  { %s106_s16 = scalar_lea.vmem %s27_s12, 32  ;;  %p111_p6 = scmp.lt.s32.totalorder %s27_s12, %s27_s12 }
   0xe   :  { %p107_p5 = scmp.ne.s32.totalorder %s27_s12, %s106_s16  ;;  %p112_p7 = scmp.lt.s32.totalorder %s106_s16, %s106_s16 }
  0x10   :  { %p113_p8 = por %p112_p7, %p111_p6 }
  0x12   :  { %p114_p9 = pnand %p113_p8, %p107_p5 }
  0x14   :  { %117 = shalt.err (!%p114_p9)
}
  0x15   :  { %29 = dma.hbm_to_vmem [thread:$0]  %s173_s1, 32, %s27_s12, [#allocation6]  }
  0x16   :  { %138 = dma.done.wait [#allocation3], 64  }
  0x17   :  { %139 = vsyncadd [#allocation3], 4294967232 }
  0x18   :  { %140 = dma.done.wait [#allocation6], 32  }
  0x19   :  { %141 = vsyncadd [#allocation6], 4294967264  ;;  %v39_v0 = vlaneseq  ;;  %v146_v1 = vmov 1983009808   ;;  %v37_v7 = vld [vmem:[#allocation5] sm:$0x3] }
  0x1a   :  { %v49_v2 = vunpack.c.l.s4 %v146_v1  ;;  %v36_v12 = vld [vmem:[#allocation2] sm:$0xf]  ;;  %s147_s0 = smov [#allocation7]  }
  0x1b   :  { %v40_v3 = vshrl.u32 %v39_v0, 7  ;;  %s64_s19 = sshll.u32 %s147_s0, 4  ;;  %s65_s19 = int_to_ptr.vmem [resolvable:$true] %s64_s19 }
  0x1c   :  { %v50_v6 = vunpack.c.0.s8 %v49_v2  ;;  %s118_s1 = scalar_lea.vmem %s65_s19, 64  ;;  %p123_p11 = scmp.lt.s32.totalorder %s65_s19, %s65_s19 }
  0x1d   :  { %v41_v4 = vsub.s32 0, %v40_v3  ;;  %v45_v5 = vsub.s32 1, %v40_v3  ;;  %p119_p10 = scmp.ne.s32.totalorder %s65_s19, %s118_s1  ;;  %p124_p12 = scmp.lt.s32.totalorder %s118_s1, %s118_s1 }
  0x1e   :  { %v53_v10 = vsub.s32 %v50_v6, %v40_v3 }
  0x1f   :  { %v42_v8 = vrot.slane %v37_v7, %v41_v4  ;;  %v46_v9 = vrot.slane %v37_v7, %v45_v5  ;;  %p125_p13 = por %p124_p12, %p123_p11 }
  0x21   :  { %v47_v11 = vcombine.low %v42_v8, %v46_v9  ;;  %p126_p0 = pnand %p125_p13, %p119_p10 }
  0x23   :  { %v54_v13 = vrot.slane %v47_v11, %v53_v10 }
  0x25   :  { %v56_v14 = vadd.f32 %v54_v13, %v36_v12 }
  0x27   :  { %57 = vst [vmem:[#allocation7] sm:$0xf] %v56_v14 }
  0x28   :  { %129 = shalt.err (!%p126_p0)
}
  0x29   :  { %67 = dma.vmem_to_hbm [thread:$0]  %s65_s19, 64, %s174_s2, [#allocation4]  }
  0x2a   :  { %142 = dma.done.wait [#allocation4], 64  }
  0x2b   :  { %143 = vsyncadd [#allocation4], 4294967232 }
  0x2c   :  { %71 = vsyncpa [#allocation3], 1 }
  0x2d   :  { %72 = vsyncpa [#allocation6], 1 }
  0x2e   :  { %73 = vsyncpa [#allocation4], 1 }

</bundles_post_ra>
